<compile_context>
chip_gen: v5e
topology: v5e:2x2
jax: 0.10.0
libtpu: 0.0.40
codegen_flags: <defaults>
</compile_context>

<pallas_src>
import math
import functools

import jax
import jax.numpy as jnp
from jax.experimental import pallas as pl
from jax.experimental.pallas import tpu as pltpu


# ----------------------------- tiling helper --------------------------------

def _fit_tile(dim, pref, align):
    """Largest multiple of `align` that is <= pref and divides dim; falls back to full dim."""
    if dim <= pref:
        return dim
    t = (pref // align) * align
    while t >= align:
        if dim % t == 0:
            return t
        t -= align
    return dim


# ----------------------------- fused RMSNorm + matmul (QKV projection) ------

def _norm_matmul_kernel(x_ref, g_ref, w_ref, o_ref, *, eps):
    x = x_ref[...].astype(jnp.float32)                      # (tm, D)
    ms = jnp.mean(x * x, axis=-1, keepdims=True)
    xn = x * jax.lax.rsqrt(ms + eps) * g_ref[...].astype(jnp.float32)
    o_ref[...] = jnp.dot(
        xn.astype(x_ref.dtype), w_ref[...], preferred_element_type=jnp.float32
    ).astype(o_ref.dtype)


def fused_norm_matmul(x2d, norm_w, w, *, eps=1e-6, tm_pref=256, tn_pref=512):
    M, D = x2d.shape
    Kw, N = w.shape
    assert Kw == D
    tm = _fit_tile(M, tm_pref, 8)
    tn = _fit_tile(N, tn_pref, 128)
    return pl.pallas_call(
        functools.partial(_norm_matmul_kernel, eps=eps),
        out_shape=jax.ShapeDtypeStruct((M, N), x2d.dtype),
        grid=(M // tm, N // tn),
        in_specs=[
            pl.BlockSpec((tm, D), lambda i, j: (i, 0)),
            pl.BlockSpec((1, D), lambda i, j: (0, 0)),
            pl.BlockSpec((D, tn), lambda i, j: (0, j)),
        ],
        out_specs=pl.BlockSpec((tm, tn), lambda i, j: (i, j)),
        compiler_params=pltpu.CompilerParams(
            dimension_semantics=("parallel", "parallel")),
    )(x2d, norm_w.reshape(1, D), w)


# ----------------------------- tiled matmul + fused residual (wo proj) ------

def _matmul_residual_kernel(x_ref, w_ref, r_ref, o_ref, acc_ref):
    kk = pl.program_id(2)

    @pl.when(kk == 0)
    def _init():
        acc_ref[...] = jnp.zeros_like(acc_ref)

    acc_ref[...] += jnp.dot(x_ref[...], w_ref[...], preferred_element_type=jnp.float32)

    @pl.when(kk == pl.num_programs(2) - 1)
    def _finalize():
        o_ref[...] = (acc_ref[...] + r_ref[...].astype(jnp.float32)).astype(o_ref.dtype)


def matmul_residual(x2d, w, res2d, *, tm_pref=256, tn_pref=512, tk_pref=512):
    M, K = x2d.shape
    _, N = w.shape
    tm = _fit_tile(M, tm_pref, 8)
    tn = _fit_tile(N, tn_pref, 128)
    tk = _fit_tile(K, tk_pref, 128)
    return pl.pallas_call(
        _matmul_residual_kernel,
        out_shape=jax.ShapeDtypeStruct((M, N), res2d.dtype),
        grid=(M // tm, N // tn, K // tk),
        in_specs=[
            pl.BlockSpec((tm, tk), lambda i, j, k: (i, k)),
            pl.BlockSpec((tk, tn), lambda i, j, k: (k, j)),
            pl.BlockSpec((tm, tn), lambda i, j, k: (i, j)),
        ],
        out_specs=pl.BlockSpec((tm, tn), lambda i, j, k: (i, j)),
        scratch_shapes=[pltpu.VMEM((tm, tn), jnp.float32)],
        compiler_params=pltpu.CompilerParams(
            dimension_semantics=("parallel", "parallel", "arbitrary")),
    )(x2d, w, res2d)


# ----------------------------- flash attention (RoPE + GQA + online softmax) -

def _flash_attn_kernel(q_ref, k_ref, v_ref, cosq_ref, sinq_ref, cosk_ref, sink_ref,
                       o_ref, m_sc, l_sc, acc_sc, *, scale, n_rep, head_dim):
    ki = pl.program_id(3)
    half = head_dim // 2

    @pl.when(ki == 0)
    def _init():
        m_sc[...] = jnp.full_like(m_sc, -jnp.inf)
        l_sc[...] = jnp.zeros_like(l_sc)
        acc_sc[...] = jnp.zeros_like(acc_sc)

    def rope(xf, cos, sin):
        # rotate_half(x) = concat(-x[..., half:], x[..., :half])
        rot = jnp.concatenate([-xf[:, half:], xf[:, :half]], axis=-1)
        return xf * cos + rot * sin

    # K/V tile for this KV head (RoPE applied once per kv head per step, not per q head).
    kf = k_ref[0].astype(jnp.float32)                                    # (tk, Dh)
    kr = rope(kf, cosk_ref[...].astype(jnp.float32), sink_ref[...].astype(jnp.float32))
    v = v_ref[0]                                                          # (tk, Dh), MXU dtype

    qf = q_ref[0].astype(jnp.float32)                                     # (tq, n_rep*Dh)
    cosq = cosq_ref[...].astype(jnp.float32)
    sinq = sinq_ref[...].astype(jnp.float32)

    # Static unroll over the q heads that share this KV head (GQA group).
    for h in range(n_rep):
        off = h * head_dim
        qr = rope(qf[:, off:off + head_dim], cosq, sinq)                  # (tq, Dh)

        s = jnp.dot(qr, kr.T, preferred_element_type=jnp.float32) * scale  # (tq, tk)
        m_prev = m_sc[h]                                                  # (tq, 1)
        m_new = jnp.maximum(m_prev, jnp.max(s, axis=-1, keepdims=True))
        alpha = jnp.exp(m_prev - m_new)
        p = jnp.exp(s - m_new)
        l_sc[h] = alpha * l_sc[h] + jnp.sum(p, axis=-1, keepdims=True)
        pv = jnp.dot(p.astype(v.dtype), v, preferred_element_type=jnp.float32)
        acc_sc[:, pl.ds(off, head_dim)] = alpha * acc_sc[:, pl.ds(off, head_dim)] + pv
        m_sc[h] = m_new

    @pl.when(ki == pl.num_programs(3) - 1)
    def _finalize():
        tq = acc_sc.shape[0]
        inv_l = jnp.concatenate(
            [jnp.broadcast_to(pl.reciprocal(l_sc[h], approx=True), (tq, head_dim))
             for h in range(n_rep)], axis=-1)                             # (tq, n_rep*Dh)
        # single lane-dense store of the whole head-group slab
        o_ref[0] = (acc_sc[...] * inv_l).astype(o_ref.dtype)


def flash_attention(qkv3, cos, sin, n_heads, n_kv_heads, head_dim, *, tq_pref=256, tk_pref=512):
    """qkv3: (B, S, (n_heads + 2*n_kv_heads)*head_dim) fused projection output.
    Returns attention output in (B, S, n_heads*head_dim) layout (no transposes needed)."""
    B, S, _ = qkv3.shape
    n_rep = n_heads // n_kv_heads
    dq = n_rep * head_dim
    tq = _fit_tile(S, tq_pref, 8)
    tk = _fit_tile(S, tk_pref, 8)
    scale = 1.0 / math.sqrt(head_dim)

    q_spec = pl.BlockSpec((1, tq, dq), lambda b, g, qi, ki: (b, qi, g))
    k_spec = pl.BlockSpec((1, tk, head_dim),
                          lambda b, g, qi, ki: (b, ki, n_heads + g))
    v_spec = pl.BlockSpec((1, tk, head_dim),
                          lambda b, g, qi, ki: (b, ki, n_heads + n_kv_heads + g))
    cq_spec = pl.BlockSpec((tq, head_dim), lambda b, g, qi, ki: (qi, 0))
    ck_spec = pl.BlockSpec((tk, head_dim), lambda b, g, qi, ki: (ki, 0))

    return pl.pallas_call(
        functools.partial(_flash_attn_kernel, scale=scale, n_rep=n_rep, head_dim=head_dim),
        out_shape=jax.ShapeDtypeStruct((B, S, n_heads * head_dim), qkv3.dtype),
        grid=(B, n_kv_heads, S // tq, S // tk),
        in_specs=[q_spec, k_spec, v_spec, cq_spec, cq_spec, ck_spec, ck_spec],
        out_specs=pl.BlockSpec((1, tq, dq), lambda b, g, qi, ki: (b, qi, g)),
        scratch_shapes=[
            pltpu.VMEM((n_rep, tq, 1), jnp.float32),   # running max per head
            pltpu.VMEM((n_rep, tq, 1), jnp.float32),   # running sum per head
            pltpu.VMEM((tq, dq), jnp.float32),         # lane-dense accumulator
        ],
        compiler_params=pltpu.CompilerParams(
            dimension_semantics=("parallel", "parallel", "parallel", "arbitrary")),
    )(qkv3, qkv3, qkv3, cos, sin, cos, sin)


# ----------------------------- fused RMSNorm + SwiGLU + residual ------------

def _norm_swiglu_residual_kernel(h_ref, g_ref, w1_ref, w3_ref, w2_ref, o_ref,
                                 xn_sc, acc_sc, *, eps):
    f = pl.program_id(1)

    @pl.when(f == 0)
    def _init():
        x = h_ref[...].astype(jnp.float32)
        ms = jnp.mean(x * x, axis=-1, keepdims=True)
        xn_sc[...] = x * jax.lax.rsqrt(ms + eps) * g_ref[...].astype(jnp.float32)
        acc_sc[...] = jnp.zeros_like(acc_sc)

    xn = xn_sc[...].astype(w1_ref.dtype)
    h1 = jnp.dot(xn, w1_ref[...], preferred_element_type=jnp.float32)
    h3 = jnp.dot(xn, w3_ref[...], preferred_element_type=jnp.float32)
    gated = h1 * jax.nn.sigmoid(h1) * h3                    # SiLU(w1 x) * (w3 x)
    acc_sc[...] += jnp.dot(gated.astype(w2_ref.dtype), w2_ref[...],
                           preferred_element_type=jnp.float32)

    @pl.when(f == pl.num_programs(1) - 1)
    def _finalize():
        o_ref[...] = (acc_sc[...] + h_ref[...].astype(jnp.float32)).astype(o_ref.dtype)


def fused_norm_swiglu_residual(h2d, norm_w, w1, w3, w2, *, eps=1e-6,
                               tm_pref=256, tf_pref=512):
    M, D = h2d.shape
    _, Hf = w1.shape
    tm = _fit_tile(M, tm_pref, 8)
    tf = _fit_tile(Hf, tf_pref, 128)
    return pl.pallas_call(
        functools.partial(_norm_swiglu_residual_kernel, eps=eps),
        out_shape=jax.ShapeDtypeStruct((M, D), h2d.dtype),
        grid=(M // tm, Hf // tf),
        in_specs=[
            pl.BlockSpec((tm, D), lambda i, f: (i, 0)),
            pl.BlockSpec((1, D), lambda i, f: (0, 0)),
            pl.BlockSpec((D, tf), lambda i, f: (0, f)),
            pl.BlockSpec((D, tf), lambda i, f: (0, f)),
            pl.BlockSpec((tf, D), lambda i, f: (f, 0)),
        ],
        out_specs=pl.BlockSpec((tm, D), lambda i, f: (i, 0)),
        scratch_shapes=[pltpu.VMEM((tm, D), jnp.float32),   # normalized activations
                        pltpu.VMEM((tm, D), jnp.float32)],  # ffn-axis accumulator
        compiler_params=pltpu.CompilerParams(
            dimension_semantics=("parallel", "arbitrary")),
    )(h2d, norm_w.reshape(1, D), w1, w3, w2)


# ----------------------------- TransformerBlock wrapper ---------------------

def rope_tables(seq_len, head_dim, base=10000.0):
    inv_freq = 1.0 / (base ** (jnp.arange(0, head_dim, 2, dtype=jnp.float32) / head_dim))
    t = jnp.arange(seq_len, dtype=jnp.float32)
    freqs = jnp.einsum("i,j->ij", t, inv_freq)              # (S, Dh/2)
    emb = jnp.concatenate([freqs, freqs], axis=-1)          # (S, Dh)
    return jnp.cos(emb), jnp.sin(emb)


def transformer_block(x, params, n_heads, n_kv_heads, eps=1e-6):
    B, S, D = x.shape
    Dh = D // n_heads
    x2d = x.reshape(B * S, D)

    # ---- attention sub-block: fused RMSNorm + QKV projection -> flash attn -> wo + residual
    # (in a real model store the weights pre-fused instead of concatenating per call)
    wqkv = jnp.concatenate([params["wq"], params["wk"], params["wv"]], axis=1)
    qkv = fused_norm_matmul(x2d, params["attn_norm_w"], wqkv, eps=eps)
    qkv3 = qkv.reshape(B, S, (n_heads + 2 * n_kv_heads) * Dh)

    cos, sin = rope_tables(S, Dh)
    attn = flash_attention(qkv3, cos, sin, n_heads, n_kv_heads, Dh)      # (B, S, D)

    h2d = matmul_residual(attn.reshape(B * S, D), params["wo"], x2d)     # x + attn @ wo

    # ---- feed-forward sub-block: fused RMSNorm + SwiGLU + residual
    out2d = fused_norm_swiglu_residual(h2d, params["ffn_norm_w"],
                                       params["w1"], params["w3"], params["w2"], eps=eps)
    return out2d.reshape(B, S, D)


# ----------------------------- pure-JAX reference (sanity check) ------------

def reference_block(x, params, n_heads, n_kv_heads, eps=1e-6):
    B, S, D = x.shape
    Dh = D // n_heads
    n_rep = n_heads // n_kv_heads

    def rms(z, w):
        zf = z.astype(jnp.float32)
        return (zf * jax.lax.rsqrt(jnp.mean(zf * zf, -1, keepdims=True) + eps)
                ).astype(z.dtype) * w

    def rot_half(z):
        return jnp.concatenate([-z[..., Dh // 2:], z[..., :Dh // 2]], axis=-1)

    xn = rms(x, params["attn_norm_w"])
    q = (xn @ params["wq"]).reshape(B, S, n_heads, Dh).transpose(0, 2, 1, 3)
    k = (xn @ params["wk"]).reshape(B, S, n_kv_heads, Dh).transpose(0, 2, 1, 3)
    v = (xn @ params["wv"]).reshape(B, S, n_kv_heads, Dh).transpose(0, 2, 1, 3)
    cos, sin = rope_tables(S, Dh)
    cos, sin = cos[None, None], sin[None, None]
    q = q * cos + rot_half(q) * sin
    k = k * cos + rot_half(k) * sin
    k = jnp.repeat(k, n_rep, axis=1)
    v = jnp.repeat(v, n_rep, axis=1)
    scores = jnp.einsum("bhqd,bhkd->bhqk", q, k) / math.sqrt(Dh)
    p = jax.nn.softmax(scores, axis=-1)
    o = jnp.einsum("bhqk,bhkd->bhqd", p, v).transpose(0, 2, 1, 3).reshape(B, S, D)
    h = x + o @ params["wo"]

    hn = rms(h, params["ffn_norm_w"])
    g = jax.nn.silu(hn @ params["w1"]) * (hn @ params["w3"])
    return h + g @ params["w2"]


# ----------------------------- main ------------------------------------------

if __name__ == "__main__":
    B, S = 2, 8
    n_heads, n_kv_heads = 4, 2
    head_dim = 128                                   # lane-width heads -> lane-aligned GQA slicing
    D = n_heads * head_dim                           # 512
    ffn_dim = (int(8 * D / 3) + 255) // 256 * 256    # 1536

    key = jax.random.PRNGKey(0)
    keys = jax.random.split(key, 8)
    w_scale = 0.02
    params = {
        "attn_norm_w": jnp.ones((D,), jnp.float32),
        "ffn_norm_w": jnp.ones((D,), jnp.float32),
        # linear weights stored as (in, out) == torch weight transposed
        "wq": w_scale * jax.random.normal(keys[0], (D, n_heads * head_dim), jnp.float32),
        "wk": w_scale * jax.random.normal(keys[1], (D, n_kv_heads * head_dim), jnp.float32),
        "wv": w_scale * jax.random.normal(keys[2], (D, n_kv_heads * head_dim), jnp.float32),
        "wo": w_scale * jax.random.normal(keys[3], (n_heads * head_dim, D), jnp.float32),
        "w1": w_scale * jax.random.normal(keys[4], (D, ffn_dim), jnp.float32),
        "w3": w_scale * jax.random.normal(keys[5], (D, ffn_dim), jnp.float32),
        "w2": w_scale * jax.random.normal(keys[6], (ffn_dim, D), jnp.float32),
    }
    x = jax.random.normal(keys[7], (B, S, D), jnp.float32)

    out = jax.block_until_ready(transformer_block(x, params, n_heads, n_kv_heads))
    ref = reference_block(x, params, n_heads, n_kv_heads)

    assert out.shape == (B, S, D)
    max_err = float(jnp.max(jnp.abs(out - ref)))
    assert jnp.allclose(out, ref, atol=2e-3, rtol=2e-3), f"max abs err {max_err}"
    print("KERNEL_OK")
</pallas_src>

<mosaic_0001>
module attributes {stable_mosaic.version = 11 : i64} {
  func.func @_norm_matmul_kernel(%arg0: i32, %arg1: i32, %arg2: memref<16x512xf32, #tpu.memory_space<vmem>>, %arg3: memref<1x512xf32, #tpu.memory_space<vmem>>, %arg4: memref<512x512xf32, #tpu.memory_space<vmem>>, %arg5: memref<16x512xf32, #tpu.memory_space<vmem>>) attributes {dimension_semantics = [#tpu.dimension_semantics<parallel>, #tpu.dimension_semantics<parallel>], iteration_bounds = array<i64: 1, 2>, scalar_prefetch = 0 : i64, scratch_operands = 0 : i64, tpu.core_type = #tpu.core_type<tc>, window_params = [{transform_indices = @transform_0, window_bounds = array<i64: 16, 512>}, {pipeline_mode = #tpu.pipeline_mode<synchronous>, transform_indices = @transform_1, window_bounds = array<i64: 1, 512>}, {transform_indices = @transform_2, window_bounds = array<i64: 512, 512>}, {transform_indices = @transform_3, window_bounds = array<i64: 16, 512>}]} {
    %c0 = arith.constant 0 : index
    %c0_0 = arith.constant 0 : index
    %0 = vector.load %arg2[%c0, %c0_0] : memref<16x512xf32, #tpu.memory_space<vmem>>, vector<16x512xf32>
    %1 = arith.mulf %0, %0 : vector<16x512xf32>
    %cst = arith.constant dense<0.000000e+00> : vector<16xf32>
    %2 = vector.multi_reduction <add>, %1, %cst [1] : vector<16x512xf32> to vector<16xf32>
    %3 = vector.shape_cast %2 : vector<16xf32> to vector<16x1xf32>
    %cst_1 = arith.constant 5.120000e+02 : f32
    %4 = vector.broadcast %cst_1 : f32 to vector<16x1xf32>
    %5 = arith.divf %3, %4 : vector<16x1xf32>
    %cst_2 = arith.constant 9.99999997E-7 : f32
    %6 = vector.broadcast %cst_2 : f32 to vector<16x1xf32>
    %7 = arith.addf %5, %6 : vector<16x1xf32>
    %8 = math.rsqrt %7 : vector<16x1xf32>
    %9 = vector.broadcast %8 : vector<16x1xf32> to vector<16x512xf32>
    %10 = arith.mulf %0, %9 : vector<16x512xf32>
    %c0_3 = arith.constant 0 : index
    %c0_4 = arith.constant 0 : index
    %11 = vector.load %arg3[%c0_3, %c0_4] : memref<1x512xf32, #tpu.memory_space<vmem>>, vector<1x512xf32>
    %12 = vector.broadcast %11 : vector<1x512xf32> to vector<16x512xf32>
    %13 = arith.mulf %10, %12 : vector<16x512xf32>
    %c0_5 = arith.constant 0 : index
    %c0_6 = arith.constant 0 : index
    %14 = vector.load %arg4[%c0_5, %c0_6] : memref<512x512xf32, #tpu.memory_space<vmem>>, vector<512x512xf32>
    %cst_7 = arith.constant dense<0.000000e+00> : vector<16x512xf32>
    %15 = tpu.matmul %13, %14, %cst_7 {dimension_numbers = #tpu.dot_dimension_numbers<[1], [0], [0], [1], [0, 0, 1, 1], [], []>} : vector<16x512xf32>, vector<512x512xf32>, vector<16x512xf32> -> vector<16x512xf32>
    %c0_8 = arith.constant 0 : index
    %c0_9 = arith.constant 0 : index
    %16 = vector.load %arg5[%c0_8, %c0_9] : memref<16x512xf32, #tpu.memory_space<vmem>>, vector<16x512xf32>
    tpu.vector_store %arg5[%c0_8, %c0_9], %15 {strides = array<i32>} : memref<16x512xf32, #tpu.memory_space<vmem>>, vector<16x512xf32>,
    return
  }
  func.func @transform_0(%arg0: i32, %arg1: i32) -> (i32, i32) {
    %c0_i32 = arith.constant 0 : i32
    %c0_i32_0 = arith.constant 0 : i32
    return %arg0, %c0_i32 : i32, i32
  }
  func.func @transform_1(%arg0: i32, %arg1: i32) -> (i32, i32) {
    %c0_i32 = arith.constant 0 : i32
    %c0_i32_0 = arith.constant 0 : i32
    %c0_i32_1 = arith.constant 0 : i32
    return %c0_i32, %c0_i32_0 : i32, i32
  }
  func.func @transform_2(%arg0: i32, %arg1: i32) -> (i32, i32) {
    %c0_i32 = arith.constant 0 : i32
    %c0_i32_0 = arith.constant 0 : i32
    return %c0_i32, %arg1 : i32, i32
  }
  func.func @transform_3(%arg0: i32, %arg1: i32) -> (i32, i32) {
    %c0_i32 = arith.constant 0 : i32
    return %arg0, %arg1 : i32, i32
  }
}

</mosaic_0001>

<bundles_post_ra>
// kernel: tpu_custom_call.1
= control target key start
LH: loop header
LB: loop body
LE: loop exit
PB: predicated region body
PF: predicated region fallthrough
CT: control target
= control target key end

     0   :  { %s1947_s0 = inlined_call_operand.hbm [shape: f32[16,512], index: 0, kind: input, shape index: {}]   ;;  %s1948_s1 = inlined_call_operand.hbm [shape: f32[1,512], index: 1, kind: input, shape index: {}]   ;;  %s1949_s2 = inlined_call_operand.hbm [shape: f32[512,1024], index: 2, kind: input, shape index: {}]   ;;  %s1950_s3 = inlined_call_operand.hbm [shape: f32[16,1024], index: 3, kind: output, shape index: {}]  }
   0x1   :  { %1955 = sst [smem:[#allocation14_spill]] %s1947_s0 }
   0x2   :  { %1956 = sst [smem:[#allocation15_spill]] %s1948_s1 }
   0x3   :  { %8 = vsyncpa [#allocation3], 0 }
   0x4   :  { %9 = vsyncpa [#allocation6], 0 }
   0x5   :  { %10 = vsyncpa [#allocation4], 0 }
   0x6   :  { %12 = vsyncpa [#allocation4 + $0x1], 0  ;;  %s1414_s12 = smov 0   ;;  %s1416_s13 = smov 0  }
   0x7   :  { %s1418_s14 = smov 0   ;;  %s1420_s15 = smov 0  }
   0x8   :  { %s1422_s16 = smov 0   ;;  %s1424_s17 = smov 0  }
   0x9 LB: > { %1957 = sst [smem:[#allocation13_spill]] %s1383_s17  ;;  %s1445_s18 = sadd.s32 4294967295, %s1383_s17   ;;  %s1383_s17 = sphi %s1424_s17, %s18_s17   ;;  %s1379_s16 = sphi %s1422_s16, %s1973_s16   ;;  %s1375_s15 = sphi %s1420_s15, %s1972_s15   ;;  %s1371_s14 = sphi %s1418_s14, %s1971_s14   ;;  %s1367_s13 = sphi %s1416_s13, %s1970_s13   ;;  %s1363_s12 = sphi %s1414_s12, %s1969_s12  }
   0xa   : > { %s1087_s19 = sadd.s32 4294967294, %s1383_s17   ;;  %p91_p0 = scmp.ne.s32.totalorder %s1371_s14, %s1367_s13 }
   0xb   : > { %p92_p1 = scmp.eq.s32.totalorder %s1383_s17, 0  ;;  %p97_p2 = scmp.ne.s32.totalorder %s1367_s13, %s1363_s12 }
   0xc   : > { %p98_p3 = scmp.eq.s32.totalorder %s1445_s18, 0  ;;  %p123_p5 = scmp.eq.s32.totalorder %s1445_s18, 1 }
   0xd   : > { %p1454_p4 = por %p92_p1, %p91_p0  ;;  %p129_p7 = scmp.eq.s32.totalorder %s1087_s19, 1 }
   0xe   : > { %p1461_p6 = por %p98_p3, %p97_p2  ;;  %p1465_p8 = por %p123_p5, %p91_p0 }
   0xf   : > { %p1088_p9 = scmp.ge.s32.totalorder %s1383_s17, 1  ;;  %p1470_p10 = por %p129_p7, %p97_p2 }
  0x10   : > { %p136_p11 = scmp.lt.s32.totalorder %s1383_s17, 3  ;;  %s1962_s0 = sld [smem:[#allocation14_spill]] }
  0x11   : > { %s1385_s28 = smov [#allocation2]   ;;  %p1091_p1 = scmp.ge.s32.totalorder %s1383_s17, 2 }
  0x12   : > { %p1478_p12 = pnand %p1088_p9, %p136_p11  ;;  %s153_s29 = sshll.u32 %s1385_s28, 4  ;;  %s154_s29 = int_to_ptr.vmem [resolvable:$true] %s153_s29 }
  0x13   : > { %p1136_p2 = scmp.lt.s32.totalorder %s1383_s17, 2  ;;  %s1964_s1 = sld [smem:[#allocation15_spill]] }
  0x14   : > { %p1119_p13 = pneg %p1478_p12  ;;  %s1951_s6 = smov 512  }
  0x15   : > { %s1952_s7 = smov 32   ;;  %p1496_p5 = pnand %p1136_p2, %p1454_p4 }
  0x16   : > { %s151_s26 = sshll.u32 %s1962_s0, 4  ;;  %p1120_p0 = pnand %p1119_p13, %p98_p3  ;;  %s152_s26 = int_to_ptr.hbm [resolvable:$true] %s151_s26 }
  0x17   : > { %s1388_s9 = smov [#allocation5]   ;;  %s84_s11 = sadd.s32 1, %s1371_s14 }
  0x18   : > { %1122 = dma.hbm_to_vmem [thread:$0]  (!%p1120_p0), %s152_s26, 1024, %s154_s29, [#allocation3], %s1951_s6, %s1951_s6, %s1952_s7  }
  0x19   : > { %s166_s5 = sshll.u32 %s1964_s1, 4  ;;  %s168_s10 = sshll.u32 %s1388_s9, 4  ;;  %s167_s5 = int_to_ptr.hbm [resolvable:$true] %s166_s5  ;;  %s169_s10 = int_to_ptr.vmem [resolvable:$true] %s168_s10 }
  0x1a   : > { %1125 = dma.hbm_to_vmem [thread:$0]  (!%p1120_p0), %s167_s5, 64, %s169_s10, [#allocation6]  }
  0x1b   : > { %s27_s19 = sadd.s32 1, %s1379_s16  ;;  %s179_s24 = sand.u32 1, %s1383_s17  }
  0x1c   : > { %p28_p7 = scmp.ge.s32.totalorder %s27_s19, 2  ;;  %s181_s25 = sand.u32 1, %s1371_s14  }
  0x1d   : > { %s1105_s28 = sshll.u32 %s1379_s16, 5  ;;  %s1092_s20 = sshll.u32 %s181_s25, 11 }
  0x1e   : > { %s1975_s19 = smov (%p28_p7, %s27_s19), 0  ;;  %s188_s30 = scalar_lea.hbm %s1949_s2, %s1105_s28 }
  0x1f   : > { %s81_s4 = ssub.s32 %s1379_s16, %s1975_s19  ;;  %s189_s9 = sshll.u32 %s188_s30, 4  ;;  %s190_s9 = int_to_ptr.hbm [resolvable:$true] %s189_s9 }
  0x20   : > { %p82_p4 = scmp.eq.s32.totalorder %s81_s4, 0  ;;  %s183_s5 = scalar_lea.vmem [#allocation7], %s1092_s20 }
  0x21   : > { %s191_s10 = sshll.u32 %s183_s5, 4  ;;  %s180_s7 = scalar_lea.sflag [#allocation3], %s179_s24  ;;  %s192_s10 = int_to_ptr.vmem [resolvable:$true] %s191_s10 }
  0x22   : > { %s1513_s6 = scalar_select %p82_p4, %s1371_s14, %s84_s11  }
  0x23   : > { %s1389_s0 = smov 1024   ;;  %s1966_s1 = smov 32  }
  0x24   : > { %s1967_s17 = smov 512   ;;  %203 = sbr.rel (%p1478_p12) target bundleno = 425 (0x1a9), region = 32 }
  0x25   : > { %1129 = dma.hbm_to_vmem [thread:$0]  (!%p1496_p5), %s190_s9, 32768, %s192_s10, %s180_s7, %s1389_s0, %s1967_s17, %s1966_s1  }
  0x29   : > { %1346 = dma.done.wait (%p98_p3), [#allocation3], 1024  }
  0x2a   : > { %1348 = vsyncadd (%p98_p3), [#allocation3], 4294966272 }
  0x2b   : > { %1350 = dma.done.wait (%p98_p3), [#allocation6], 64  }
  0x2c   : > { %1352 = vsyncadd (%p98_p3), [#allocation6], 4294967232  ;;  %s215_s8 = sand.u32 1, %s1445_s18   ;;  %s1531_s0 = sand.u32 1, %s1367_s13  }
  0x2d   : > { %s1098_s1 = sshll.u32 %s1531_s0, 11  ;;  %s216_s17 = scalar_lea.sflag [#allocation3], %s215_s8 }
  0x2e   : > { %s1534_s27 = scalar_lea.vmem [#allocation7], %s1098_s1 }
  0x2f   : > { %1354 = dma.done.wait (%p1461_p6), %s216_s17, 32768  }
  0x30   : > { %1356 = vsyncadd (%p1461_p6), %s216_s17, 4294934528  ;;  %v1540_v0 = vld [vmem:[#allocation2] sm:$0xff]  ;;  %v1542_v1 = vld [vmem:[#allocation2 + $0x8] sm:$0xff]  ;;  %s1099_s18 = sshll.u32 %s1531_s0, 6  ;;  %s1106_s7 = sshll.u32 %s1375_s15, 5 }
  0x31   : > { %v1544_v2 = vld [vmem:[#allocation2 + $0x10] sm:$0xff]  ;;  %v1546_v3 = vld [vmem:[#allocation2 + $0x18] sm:$0xff]  ;;  %v255_v4 = vmul.f32 %v1540_v0, %v1540_v0  ;;  %v256_v5 = vmul.f32 %v1542_v1, %v1542_v1  ;;  %v1554_v7 = vld [vmem:[#allocation2 + $0x20] sm:$0xff]  ;;  %s1898_s21 = scalar_lea.vmem [#allocation8], %s1099_s18  ;;  %s977_s25 = scalar_lea.hbm %s1950_s3, %s1106_s7 }
  0x32   : > { %v257_v6 = vmul.f32 %v1544_v2, %v1544_v2  ;;  %v1556_v8 = vld [vmem:[#allocation2 + $0x28] sm:$0xff]  ;;  %v1558_v9 = vld [vmem:[#allocation2 + $0x30] sm:$0xff]  ;;  %v259_v10 = vmul.f32 %v1554_v7, %v1554_v7  ;;  %v258_v13 = vmul.f32 %v1546_v3, %v1546_v3  ;;  %v1578_v27 = vld [vmem:[#allocation2 + $0x38] sm:$0xff]  ;;  %s978_s28 = sshll.u32 %s1898_s21, 4  ;;  %s980_s20 = sshll.u32 %s977_s25, 4  ;;  %s979_s28 = int_to_ptr.vmem [resolvable:$true] %s978_s28  ;;  %s981_s20 = int_to_ptr.hbm [resolvable:$true] %s980_s20 }
  0x33   : > { %v260_v11 = vmul.f32 %v1556_v8, %v1556_v8  ;;  %v390_v12 = vld [vmem:[%s1534_s27 + $0x1e0] sm:$0xff]  ;;  %v263_v14 = vadd.f32 %v256_v5, %v255_v4  ;;  %v261_v22 = vmul.f32 %v1558_v9, %v1558_v9  ;;  %v262_v35 = vmul.f32 %v1578_v27, %v1578_v27  ;;  %s963_s15 = scalar_lea.sflag [#allocation4], %s1531_s0  ;;  %s1307_s26 = sshra.s32 %s981_s20, 4  ;;  %s1308_s26 = int_to_ptr.hbm [resolvable:$true] %s1307_s26 }
  0x34   : > { %586 = vmatpush.msra.mxu0 %v390_v12  ;;  %v454_v15 = vld [vmem:[%s1534_s27 + $0x3e0] sm:$0xff]  ;;  %s1309_s29 = scalar_lea.hbm %s1308_s26, 64  ;;  %s1313_s9 = scalar_lea.hbm %s1950_s3, 128 }
  0x35   : > { %v518_v16 = vld [vmem:[%s1534_s27 + $0x5e0] sm:$0xff]  ;;  %609 = vmatpush.msra.mxu1 %v454_v15  ;;  %v264_v21 = vadd.f32 %v263_v14, %v257_v6  ;;  %v268_v23 = vadd.f32 %v260_v11, %v259_v10  ;;  %p1310_p3 = scmp.ne.s32.totalorder %s1308_s26, %s1309_s29  ;;  %p1314_p11 = scmp.lt.s32.totalorder %s1308_s26, %s1950_s3 }
  0x36   : > { %v582_v17 = vld [vmem:[%s1534_s27 + $0x7e0] sm:$0xff]  ;;  %632 = vmatpush.msra.mxu2 %v518_v16  ;;  %p1315_p12 = scmp.lt.s32.totalorder %s1313_s9, %s1309_s29 }
  0x37   : > { %v386_v18 = vld [vmem:[%s1534_s27 + $0x1c0] sm:$0xff]  ;;  %655 = vmatpush.msra.mxu3 %v582_v17  ;;  %v265_v30 = vadd.f32 %v264_v21, %v258_v13  ;;  %v269_v36 = vadd.f32 %v268_v23, %v261_v22  ;;  %p1311_p6 = pnand %p1310_p3, %p1465_p8 }
  0x38   : > { %v450_v19 = vld [vmem:[%s1534_s27 + $0x3c0] sm:$0xff]  ;;  %587 = vmatpush.msra.mxu0 %v386_v18  ;;  %p1316_p13 = por %p1315_p12, %p1314_p11 }
  0x39   : > { %v514_v20 = vld [vmem:[%s1534_s27 + $0x5c0] sm:$0xff]  ;;  %610 = vmatpush.msra.mxu1 %v450_v19  ;;  %266 = vadd.xlane.f32.xlu0 %v265_v30  ;;  %v270_v45 = vadd.f32 %v269_v36, %v262_v35  ;;  %v391_v30 = vld [vmem:[%s1534_s27 + $0x1e8] sm:$0xff]  ;;  %p1312_p9 = pneg %p1311_p6 }
  0x3a   : > { %v578_v24 = vld [vmem:[%s1534_s27 + $0x7c0] sm:$0xff]  ;;  %633 = vmatpush.msra.mxu2 %v514_v20  ;;  %v451_v35 = vld [vmem:[%s1534_s27 + $0x3c8] sm:$0xff] }
  0x3b   : > { %v382_v25 = vld [vmem:[%s1534_s27 + $0x1a0] sm:$0xff]  ;;  %656 = vmatpush.msra.mxu3 %v578_v24  ;;  %v515_v36 = vld [vmem:[%s1534_s27 + $0x5c8] sm:$0xff]  ;;  %p1317_p0 = pnand %p1316_p13, %p1312_p9 }
  0x3c   : > { %v446_v26 = vld [vmem:[%s1534_s27 + $0x3a0] sm:$0xff]  ;;  %588 = vmatpush.msra.mxu0 %v382_v25 }
  0x3d   : > { %v510_v28 = vld [vmem:[%s1534_s27 + $0x5a0] sm:$0xff]  ;;  %611 = vmatpush.msra.mxu1 %v446_v26 }
  0x3e   : > { %v574_v29 = vld [vmem:[%s1534_s27 + $0x7a0] sm:$0xff]  ;;  %634 = vmatpush.msra.mxu2 %v510_v28 }
  0x3f   : > { %v378_v31 = vld [vmem:[%s1534_s27 + $0x180] sm:$0xff]  ;;  %657 = vmatpush.msra.mxu3 %v574_v29 }
  0x40   : > { %v442_v32 = vld [vmem:[%s1534_s27 + $0x380] sm:$0xff]  ;;  %589 = vmatpush.msra.mxu0 %v378_v31  ;;  %v455_v31 = vld [vmem:[%s1534_s27 + $0x3e8] sm:$0xff] }
  0x41   : > { %v506_v33 = vld [vmem:[%s1534_s27 + $0x580] sm:$0xff]  ;;  %612 = vmatpush.msra.mxu1 %v442_v32  ;;  %271 = vadd.xlane.f32.xlu0 %v270_v45  ;;  %v519_v32 = vld [vmem:[%s1534_s27 + $0x5e8] sm:$0xff] }
  0x42   : > { %v570_v34 = vld [vmem:[%s1534_s27 + $0x780] sm:$0xff]  ;;  %635 = vmatpush.msra.mxu2 %v506_v33  ;;  %v583_v33 = vld [vmem:[%s1534_s27 + $0x7e8] sm:$0xff] }
  0x43   : > { %v374_v37 = vld [vmem:[%s1534_s27 + $0x160] sm:$0xff]  ;;  %658 = vmatpush.msra.mxu3 %v570_v34  ;;  %v387_v34 = vld [vmem:[%s1534_s27 + $0x1c8] sm:$0xff] }
  0x44   : > { %v438_v38 = vld [vmem:[%s1534_s27 + $0x360] sm:$0xff]  ;;  %590 = vmatpush.msra.mxu0 %v374_v37  ;;  %v579_v37 = vld [vmem:[%s1534_s27 + $0x7c8] sm:$0xff] }
  0x45   : > { %v502_v39 = vld [vmem:[%s1534_s27 + $0x560] sm:$0xff]  ;;  %613 = vmatpush.msra.mxu1 %v438_v38  ;;  %v383_v38 = vld [vmem:[%s1534_s27 + $0x1a8] sm:$0xff] }
  0x46   : > { %v566_v40 = vld [vmem:[%s1534_s27 + $0x760] sm:$0xff]  ;;  %636 = vmatpush.msra.mxu2 %v502_v39  ;;  %v447_v39 = vld [vmem:[%s1534_s27 + $0x3a8] sm:$0xff] }
  0x47   : > { %v370_v41 = vld [vmem:[%s1534_s27 + $0x140] sm:$0xff]  ;;  %659 = vmatpush.msra.mxu3 %v566_v40  ;;  %v511_v40 = vld [vmem:[%s1534_s27 + $0x5a8] sm:$0xff] }
  0x48   : > { %v434_v42 = vld [vmem:[%s1534_s27 + $0x340] sm:$0xff]  ;;  %591 = vmatpush.msra.mxu0 %v370_v41  ;;  %v575_v41 = vld [vmem:[%s1534_s27 + $0x7a8] sm:$0xff] }
  0x49   : > { %v498_v43 = vld [vmem:[%s1534_s27 + $0x540] sm:$0xff]  ;;  %614 = vmatpush.msra.mxu1 %v434_v42  ;;  %v379_v42 = vld [vmem:[%s1534_s27 + $0x188] sm:$0xff] }
  0x4a   : > { %v562_v44 = vld [vmem:[%s1534_s27 + $0x740] sm:$0xff]  ;;  %637 = vmatpush.msra.mxu2 %v498_v43  ;;  %v443_v43 = vld [vmem:[%s1534_s27 + $0x388] sm:$0xff] }
  0x4b   : > { %v366_v46 = vld [vmem:[%s1534_s27 + $0x120] sm:$0xff]  ;;  %660 = vmatpush.msra.mxu3 %v562_v44  ;;  %v507_v44 = vld [vmem:[%s1534_s27 + $0x588] sm:$0xff] }
  0x4c   : > { %v430_v47 = vld [vmem:[%s1534_s27 + $0x320] sm:$0xff]  ;;  %592 = vmatpush.msra.mxu0 %v366_v46  ;;  %v571_v45 = vld [vmem:[%s1534_s27 + $0x788] sm:$0xff] }
  0x4d   : > { %v494_v48 = vld [vmem:[%s1534_s27 + $0x520] sm:$0xff]  ;;  %615 = vmatpush.msra.mxu1 %v430_v47  ;;  %v375_v46 = vld [vmem:[%s1534_s27 + $0x168] sm:$0xff] }
  0x4e   : > { %v558_v49 = vld [vmem:[%s1534_s27 + $0x720] sm:$0xff]  ;;  %638 = vmatpush.msra.mxu2 %v494_v48  ;;  %v439_v47 = vld [vmem:[%s1534_s27 + $0x368] sm:$0xff] }
  0x4f   : > { %v362_v50 = vld [vmem:[%s1534_s27 + $0x100] sm:$0xff]  ;;  %661 = vmatpush.msra.mxu3 %v558_v49  ;;  %v503_v48 = vld [vmem:[%s1534_s27 + $0x568] sm:$0xff] }
  0x50   : > { %v426_v51 = vld [vmem:[%s1534_s27 + $0x300] sm:$0xff]  ;;  %593 = vmatpush.msra.mxu0 %v362_v50  ;;  %v567_v49 = vld [vmem:[%s1534_s27 + $0x768] sm:$0xff]  ;;  %v1390_v50 = vmov 512.0  }
  0x51   : > { %v490_v52 = vld [vmem:[%s1534_s27 + $0x500] sm:$0xff]  ;;  %616 = vmatpush.msra.mxu1 %v426_v51  ;;  %1197 = vrcp.f32 %v1390_v50  ;;  %v371_v51 = vld [vmem:[%s1534_s27 + $0x148] sm:$0xff] }
  0x52   : > { %v554_v53 = vld [vmem:[%s1534_s27 + $0x700] sm:$0xff]  ;;  %639 = vmatpush.msra.mxu2 %v490_v52  ;;  %v435_v52 = vld [vmem:[%s1534_s27 + $0x348] sm:$0xff] }
  0x53   : > { %v358_v54 = vld [vmem:[%s1534_s27 + $0xe0] sm:$0xff]  ;;  %662 = vmatpush.msra.mxu3 %v554_v53  ;;  %v499_v53 = vld [vmem:[%s1534_s27 + $0x548] sm:$0xff] }
  0x54   : > { %v422_v55 = vld [vmem:[%s1534_s27 + $0x2e0] sm:$0xff]  ;;  %594 = vmatpush.msra.mxu0 %v358_v54  ;;  %v563_v54 = vld [vmem:[%s1534_s27 + $0x748] sm:$0xff] }
  0x55   : > { %v486_v56 = vld [vmem:[%s1534_s27 + $0x4e0] sm:$0xff]  ;;  %617 = vmatpush.msra.mxu1 %v422_v55  ;;  %v367_v55 = vld [vmem:[%s1534_s27 + $0x128] sm:$0xff] }
  0x56   : > { %v550_v57 = vld [vmem:[%s1534_s27 + $0x6e0] sm:$0xff]  ;;  %640 = vmatpush.msra.mxu2 %v486_v56  ;;  %v431_v56 = vld [vmem:[%s1534_s27 + $0x328] sm:$0xff] }
  0x57   : > { %v354_v58 = vld [vmem:[%s1534_s27 + $0xc0] sm:$0xff]  ;;  %663 = vmatpush.msra.mxu3 %v550_v57  ;;  %v495_v57 = vld [vmem:[%s1534_s27 + $0x528] sm:$0xff] }
  0x58   : > { %v418_v59 = vld [vmem:[%s1534_s27 + $0x2c0] sm:$0xff]  ;;  %595 = vmatpush.msra.mxu0 %v354_v58  ;;  %v559_v58 = vld [vmem:[%s1534_s27 + $0x728] sm:$0xff] }
  0x59   : > { %v482_v60 = vld [vmem:[%s1534_s27 + $0x4c0] sm:$0xff]  ;;  %618 = vmatpush.msra.mxu1 %v418_v59  ;;  %v363_v59 = vld [vmem:[%s1534_s27 + $0x108] sm:$0xff] }
  0x5a   : > { %v546_v61 = vld [vmem:[%s1534_s27 + $0x6c0] sm:$0xff]  ;;  %641 = vmatpush.msra.mxu2 %v482_v60  ;;  %v427_v60 = vld [vmem:[%s1534_s27 + $0x308] sm:$0xff] }
  0x5b   : > { %v350_v62 = vld [vmem:[%s1534_s27 + $0xa0] sm:$0xff]  ;;  %664 = vmatpush.msra.mxu3 %v546_v61  ;;  %v491_v61 = vld [vmem:[%s1534_s27 + $0x508] sm:$0xff] }
  0x5c   : > { %v414_v63 = vld [vmem:[%s1534_s27 + $0x2a0] sm:$0xff]  ;;  %596 = vmatpush.msra.mxu0 %v350_v62  ;;  %v555_v62 = vld [vmem:[%s1534_s27 + $0x708] sm:$0xff] }
  0x5d   : > { %v478_v4 = vld [vmem:[%s1534_s27 + $0x4a0] sm:$0xff]  ;;  %619 = vmatpush.msra.mxu1 %v414_v63  ;;  %v1668_v63 = vpop.eup %1197 }
  0x5e   : > { %v542_v5 = vld [vmem:[%s1534_s27 + $0x6a0] sm:$0xff]  ;;  %642 = vmatpush.msra.mxu2 %v478_v4  ;;  %v359_v4 = vld [vmem:[%s1534_s27 + $0xe8] sm:$0xff]  ;;  %vm278_vm0 = vweird.f32 %v1668_v63 }
  0x5f   : > { %v346_v6 = vld [vmem:[%s1534_s27 + $0x80] sm:$0xff]  ;;  %665 = vmatpush.msra.mxu3 %v542_v5  ;;  %v423_v5 = vld [vmem:[%s1534_s27 + $0x2e8] sm:$0xff] }
  0x60   : > { %v410_v10 = vld [vmem:[%s1534_s27 + $0x280] sm:$0xff]  ;;  %597 = vmatpush.msra.mxu0 %v346_v6  ;;  %v487_v6 = vld [vmem:[%s1534_s27 + $0x4e8] sm:$0xff] }
  0x61   : > { %v474_v11 = vld [vmem:[%s1534_s27 + $0x480] sm:$0xff]  ;;  %620 = vmatpush.msra.mxu1 %v410_v10  ;;  %v551_v10 = vld [vmem:[%s1534_s27 + $0x6e8] sm:$0xff] }
  0x62   : > { %v538_v12 = vld [vmem:[%s1534_s27 + $0x680] sm:$0xff]  ;;  %643 = vmatpush.msra.mxu2 %v474_v11  ;;  %v355_v11 = vld [vmem:[%s1534_s27 + $0xc8] sm:$0xff] }
  0x63   : > { %v342_v13 = vld [vmem:[%s1534_s27 + $0x60] sm:$0xff]  ;;  %666 = vmatpush.msra.mxu3 %v538_v12  ;;  %v419_v12 = vld [vmem:[%s1534_s27 + $0x2c8] sm:$0xff] }
  0x64   : > { %v406_v14 = vld [vmem:[%s1534_s27 + $0x260] sm:$0xff]  ;;  %598 = vmatpush.msra.mxu0 %v342_v13  ;;  %v483_v13 = vld [vmem:[%s1534_s27 + $0x4c8] sm:$0xff] }
  0x65   : > { %v470_v15 = vld [vmem:[%s1534_s27 + $0x460] sm:$0xff]  ;;  %621 = vmatpush.msra.mxu1 %v406_v14  ;;  %v274_v14 = vmul.f32 512.0, %v1668_v63 }
  0x66   : > { %v534_v16 = vld [vmem:[%s1534_s27 + $0x660] sm:$0xff]  ;;  %644 = vmatpush.msra.mxu2 %v470_v15  ;;  %v547_v15 = vld [vmem:[%s1534_s27 + $0x6c8] sm:$0xff] }
  0x67   : > { %v338_v17 = vld [vmem:[%s1534_s27 + $0x40] sm:$0xff]  ;;  %667 = vmatpush.msra.mxu3 %v534_v16  ;;  %v351_v16 = vld [vmem:[%s1534_s27 + $0xa8] sm:$0xff] }
  0x68   : > { %v402_v18 = vld [vmem:[%s1534_s27 + $0x240] sm:$0xff]  ;;  %599 = vmatpush.msra.mxu0 %v338_v17  ;;  %v415_v17 = vld [vmem:[%s1534_s27 + $0x2a8] sm:$0xff] }
  0x69   : > { %v466_v19 = vld [vmem:[%s1534_s27 + $0x440] sm:$0xff]  ;;  %622 = vmatpush.msra.mxu1 %v402_v18  ;;  %v479_v18 = vld [vmem:[%s1534_s27 + $0x4a8] sm:$0xff] }
  0x6a   : > { %v530_v20 = vld [vmem:[%s1534_s27 + $0x640] sm:$0xff]  ;;  %645 = vmatpush.msra.mxu2 %v466_v19  ;;  %v543_v19 = vld [vmem:[%s1534_s27 + $0x6a8] sm:$0xff] }
  0x6b   : > { %v334_v21 = vld [vmem:[%s1534_s27 + $0x20] sm:$0xff]  ;;  %668 = vmatpush.msra.mxu3 %v530_v20  ;;  %v347_v20 = vld [vmem:[%s1534_s27 + $0x88] sm:$0xff] }
  0x6c   : > { %v398_v22 = vld [vmem:[%s1534_s27 + $0x220] sm:$0xff]  ;;  %600 = vmatpush.msra.mxu0 %v334_v21  ;;  %v411_v21 = vld [vmem:[%s1534_s27 + $0x288] sm:$0xff] }
  0x6d   : > { %v462_v23 = vld [vmem:[%s1534_s27 + $0x420] sm:$0xff]  ;;  %623 = vmatpush.msra.mxu1 %v398_v22  ;;  %v475_v22 = vld [vmem:[%s1534_s27 + $0x488] sm:$0xff] }
  0x6e   : > { %v526_v24 = vld [vmem:[%s1534_s27 + $0x620] sm:$0xff]  ;;  %646 = vmatpush.msra.mxu2 %v462_v23  ;;  %v275_v23 = vsub.f32 1.0, %v274_v14 }
  0x6f   : > { %v330_v25 = vld [vmem:[%s1534_s27] sm:$0xff]  ;;  %669 = vmatpush.msra.mxu3 %v526_v24  ;;  %v539_v24 = vld [vmem:[%s1534_s27 + $0x688] sm:$0xff] }
  0x70   : > { %v394_v26 = vld [vmem:[%s1534_s27 + $0x200] sm:$0xff]  ;;  %601 = vmatpush.msra.mxu0 %v330_v25  ;;  %v343_v25 = vld [vmem:[%s1534_s27 + $0x68] sm:$0xff] }
  0x71   : > { %v458_v28 = vld [vmem:[%s1534_s27 + $0x400] sm:$0xff]  ;;  %624 = vmatpush.msra.mxu1 %v394_v26  ;;  %v407_v26 = vld [vmem:[%s1534_s27 + $0x268] sm:$0xff] }
  0x72   : > { %v522_v29 = vld [vmem:[%s1534_s27 + $0x600] sm:$0xff]  ;;  %647 = vmatpush.msra.mxu2 %v458_v28  ;;  %678 = vmatpush.msrb.mxu0 %v391_v30  ;;  %v471_v28 = vld [vmem:[%s1534_s27 + $0x468] sm:$0xff] }
  0x73   : > { %670 = vmatpush.msra.mxu3 %v522_v29  ;;  %701 = vmatpush.msrb.mxu1 %v455_v31  ;;  %v535_v29 = vld [vmem:[%s1534_s27 + $0x668] sm:$0xff] }
  0x74   : > { %724 = vmatpush.msrb.mxu2 %v519_v32  ;;  %679 = vmatpush.msrb.mxu0 %v387_v34  ;;  %v339_v30 = vld [vmem:[%s1534_s27 + $0x48] sm:$0xff] }
  0x75   : > { %747 = vmatpush.msrb.mxu3 %v583_v33  ;;  %702 = vmatpush.msrb.mxu1 %v451_v35  ;;  %v403_v31 = vld [vmem:[%s1534_s27 + $0x248] sm:$0xff]  ;;  %v276_v33 = vmul.f32 %v1668_v63, %v275_v23  ;;  %v580_v23 = vld [vmem:[%s1534_s27 + $0x7d0] sm:$0xff] }
  0x76   : > { %725 = vmatpush.msrb.mxu2 %v515_v36  ;;  %680 = vmatpush.msrb.mxu0 %v383_v38  ;;  %v467_v32 = vld [vmem:[%s1534_s27 + $0x448] sm:$0xff] }
  0x77   : > { %748 = vmatpush.msrb.mxu3 %v579_v37  ;;  %703 = vmatpush.msrb.mxu1 %v447_v39  ;;  %v531_v34 = vld [vmem:[%s1534_s27 + $0x648] sm:$0xff] }
  0x78   : > { %726 = vmatpush.msrb.mxu2 %v511_v40  ;;  %681 = vmatpush.msrb.mxu0 %v379_v42  ;;  %v335_v35 = vld [vmem:[%s1534_s27 + $0x28] sm:$0xff]  ;;  %v277_v42 = vadd.f32 %v1668_v63, %v276_v33  ;;  %v380_v33 = vld [vmem:[%s1534_s27 + $0x190] sm:$0xff] }
  0x79   : > { %749 = vmatpush.msrb.mxu3 %v575_v41  ;;  %704 = vmatpush.msrb.mxu1 %v443_v43  ;;  %v399_v36 = vld [vmem:[%s1534_s27 + $0x228] sm:$0xff] }
  0x7a   : > { %727 = vmatpush.msrb.mxu2 %v507_v44  ;;  %682 = vmatpush.msrb.mxu0 %v375_v46  ;;  %v463_v37 = vld [vmem:[%s1534_s27 + $0x428] sm:$0xff]  ;;  %v279_v44 = vsel %vm278_vm0, %v1668_v63, %v277_v42  ;;  %v372_v42 = vld [vmem:[%s1534_s27 + $0x150] sm:$0xff] }
  0x7b   : > { %750 = vmatpush.msrb.mxu3 %v571_v45  ;;  %705 = vmatpush.msrb.mxu1 %v439_v47  ;;  %v527_v38 = vld [vmem:[%s1534_s27 + $0x628] sm:$0xff] }
  0x7c   : > { %728 = vmatpush.msrb.mxu2 %v503_v48  ;;  %683 = vmatpush.msrb.mxu0 %v371_v51  ;;  %v331_v39 = vld [vmem:[%s1534_s27 + $0x8] sm:$0xff] }
  0x7d   : > { %751 = vmatpush.msrb.mxu3 %v567_v49  ;;  %706 = vmatpush.msrb.mxu1 %v435_v52  ;;  %v395_v40 = vld [vmem:[%s1534_s27 + $0x208] sm:$0xff] }
  0x7e   : > { %729 = vmatpush.msrb.mxu2 %v499_v53  ;;  %684 = vmatpush.msrb.mxu0 %v367_v55  ;;  %v459_v41 = vld [vmem:[%s1534_s27 + $0x408] sm:$0xff] }
  0x7f   : > { %752 = vmatpush.msrb.mxu3 %v563_v54  ;;  %707 = vmatpush.msrb.mxu1 %v431_v56  ;;  %v523_v43 = vld [vmem:[%s1534_s27 + $0x608] sm:$0xff]  ;;  %v1707_v56 = vld [vmem:[#allocation5] sm:$0xf] }
  0x80   : > { %730 = vmatpush.msrb.mxu2 %v495_v57  ;;  %685 = vmatpush.msrb.mxu0 %v363_v59  ;;  %v317_v63 = vperm.slane %v1707_v56, 3 }
  0x81   : > { %753 = vmatpush.msrb.mxu3 %v559_v58  ;;  %708 = vmatpush.msrb.mxu1 %v427_v60  ;;  %v314_v60 = vperm.slane %v1707_v56, 0 }
  0x82   : > { %731 = vmatpush.msrb.mxu2 %v491_v61  ;;  %686 = vmatpush.msrb.mxu0 %v359_v4  ;;  %v315_v61 = vperm.slane %v1707_v56, 1 }
  0x83   : > { %754 = vmatpush.msrb.mxu3 %v555_v62  ;;  %709 = vmatpush.msrb.mxu1 %v423_v5  ;;  %v316_v62 = vperm.slane %v1707_v56, 2  ;;  %v488_v56 = vld [vmem:[%s1534_s27 + $0x4f0] sm:$0xff] }
  0x84   : > { %732 = vmatpush.msrb.mxu2 %v487_v6  ;;  %687 = vmatpush.msrb.mxu0 %v355_v11 }
  0x85   : > { %755 = vmatpush.msrb.mxu3 %v551_v10  ;;  %710 = vmatpush.msrb.mxu1 %v419_v12 }
  0x86   : > { %733 = vmatpush.msrb.mxu2 %v483_v13  ;;  %688 = vmatpush.msrb.mxu0 %v351_v16 }
  0x87   : > { %756 = vmatpush.msrb.mxu3 %v547_v15  ;;  %711 = vmatpush.msrb.mxu1 %v415_v17  ;;  %v456_v17 = vld [vmem:[%s1534_s27 + $0x3f0] sm:$0xff] }
  0x88   : > { %734 = vmatpush.msrb.mxu2 %v479_v18  ;;  %689 = vmatpush.msrb.mxu0 %v347_v20  ;;  %v584_v18 = vld [vmem:[%s1534_s27 + $0x7f0] sm:$0xff] }
  0x89   : > { %757 = vmatpush.msrb.mxu3 %v543_v19  ;;  %712 = vmatpush.msrb.mxu1 %v411_v21  ;;  %v388_v20 = vld [vmem:[%s1534_s27 + $0x1d0] sm:$0xff] }
  0x8a   : > { %735 = vmatpush.msrb.mxu2 %v475_v22  ;;  %690 = vmatpush.msrb.mxu0 %v343_v25  ;;  %v452_v21 = vld [vmem:[%s1534_s27 + $0x3d0] sm:$0xff] }
  0x8b   : > { %758 = vmatpush.msrb.mxu3 %v539_v24  ;;  %713 = vmatpush.msrb.mxu1 %v407_v26  ;;  %v516_v22 = vld [vmem:[%s1534_s27 + $0x5d0] sm:$0xff] }
  0x8c   : > { %736 = vmatpush.msrb.mxu2 %v471_v28  ;;  %691 = vmatpush.msrb.mxu0 %v339_v30  ;;  %v384_v25 = vld [vmem:[%s1534_s27 + $0x1b0] sm:$0xff] }
  0x8d   : > { %759 = vmatpush.msrb.mxu3 %v535_v29  ;;  %714 = vmatpush.msrb.mxu1 %v403_v31  ;;  %v448_v26 = vld [vmem:[%s1534_s27 + $0x3b0] sm:$0xff] }
  0x8e   : > { %737 = vmatpush.msrb.mxu2 %v467_v32  ;;  %692 = vmatpush.msrb.mxu0 %v335_v35  ;;  %v512_v28 = vld [vmem:[%s1534_s27 + $0x5b0] sm:$0xff] }
  0x8f   : > { %760 = vmatpush.msrb.mxu3 %v531_v34  ;;  %715 = vmatpush.msrb.mxu1 %v399_v36  ;;  %v576_v29 = vld [vmem:[%s1534_s27 + $0x7b0] sm:$0xff] }
  0x90   : > { %738 = vmatpush.msrb.mxu2 %v463_v37  ;;  %693 = vmatpush.msrb.mxu0 %v331_v39  ;;  %v444_v34 = vld [vmem:[%s1534_s27 + $0x390] sm:$0xff] }
  0x91   : > { %761 = vmatpush.msrb.mxu3 %v527_v38  ;;  %716 = vmatpush.msrb.mxu1 %v395_v40  ;;  %v508_v36 = vld [vmem:[%s1534_s27 + $0x590] sm:$0xff] }
  0x92   : > { %739 = vmatpush.msrb.mxu2 %v459_v41  ;;  %v572_v37 = vld [vmem:[%s1534_s27 + $0x790] sm:$0xff] }
  0x93   : > { %762 = vmatpush.msrb.mxu3 %v523_v43  ;;  %v440_v39 = vld [vmem:[%s1534_s27 + $0x370] sm:$0xff] }
  0x94   : > { %v504_v40 = vld [vmem:[%s1534_s27 + $0x570] sm:$0xff] }
  0x95   : > { %v568_v41 = vld [vmem:[%s1534_s27 + $0x770] sm:$0xff] }
  0x96   : > { %v436_v43 = vld [vmem:[%s1534_s27 + $0x350] sm:$0xff] }
  0xac   : > { %v267_v45 = vpop.xlane.xlu0 %266 }
  0xad   : > { %v280_v46 = vmul.f32 %v279_v44, %v267_v45  ;;  %v564_v45 = vld [vmem:[%s1534_s27 + $0x750] sm:$0xff] }
  0xaf   : > { %v282_v47 = vadd.f32 1e-06, %v280_v46  ;;  %v368_v46 = vld [vmem:[%s1534_s27 + $0x130] sm:$0xff] }
  0xb1   : > { %1199 = vrsqrt.f32 %v282_v47  ;;  %vm290_vm2 = vweird.f32 %v282_v47 }
  0xb4   : > { %v272_v48 = vpop.xlane.xlu0 %271 }
  0xb5   : > { %v281_v49 = vmul.f32 %v279_v44, %v272_v48  ;;  %v500_v44 = vld [vmem:[%s1534_s27 + $0x550] sm:$0xff] }
  0xb6   : > { %v496_v48 = vld [vmem:[%s1534_s27 + $0x530] sm:$0xff] }
  0xb7   : > { %v1200_v50 = vpop.eup %1199  ;;  %v283_v51 = vadd.f32 1e-06, %v281_v49  ;;  %v560_v49 = vld [vmem:[%s1534_s27 + $0x730] sm:$0xff] }
  0xb8   : > { %v285_v52 = vmul.f32 %v1200_v50, %v282_v47  ;;  %vm291_vm1 = vweird.f32 %v1200_v50  ;;  %v432_v47 = vld [vmem:[%s1534_s27 + $0x330] sm:$0xff] }
  0xb9   : > { %1201 = vrsqrt.f32 %v283_v51  ;;  %vm292_vm3 = vmor %vm290_vm2, %vm291_vm1  ;;  %vm300_vm4 = vweird.f32 %v283_v51 }
  0xba   : > { %v286_v53 = vmul.f32 %v1200_v50, %v285_v52  ;;  %v492_v52 = vld [vmem:[%s1534_s27 + $0x510] sm:$0xff] }
  0xbc   : > { %v287_v54 = vmul.f32 0.5, %v286_v53  ;;  %v556_v53 = vld [vmem:[%s1534_s27 + $0x710] sm:$0xff] }
  0xbe   : > { %v288_v55 = vsub.f32 1.5, %v287_v54  ;;  %v360_v54 = vld [vmem:[%s1534_s27 + $0xf0] sm:$0xff] }
  0xbf   : > { %v1202_v57 = vpop.eup %1201 }
  0xc0   : > { %v289_v58 = vmul.f32 %v1200_v50, %v288_v55  ;;  %v295_v59 = vmul.f32 %v1202_v57, %v283_v51  ;;  %vm301_vm5 = vweird.f32 %v1202_v57  ;;  %v428_v51 = vld [vmem:[%s1534_s27 + $0x310] sm:$0xff] }
  0xc1   : > { %vm302_vm6 = vmor %vm300_vm4, %vm301_vm5  ;;  %v424_v55 = vld [vmem:[%s1534_s27 + $0x2f0] sm:$0xff] }
  0xc2   : > { %v293_v4 = vsel %vm292_vm3, %v1200_v50, %v289_v58  ;;  %v296_v5 = vmul.f32 %v1202_v57, %v295_v59  ;;  %v364_v50 = vld [vmem:[%s1534_s27 + $0x110] sm:$0xff] }
  0xc3   : > { %v304_v6 = vmul.f32 %v293_v4, %v1540_v0  ;;  %v305_v10 = vmul.f32 %v293_v4, %v1542_v1  ;;  %v306_v11 = vmul.f32 %v293_v4, %v1544_v2  ;;  %v307_v12 = vmul.f32 %v293_v4, %v1546_v3  ;;  %v392_v2 = vld [vmem:[%s1534_s27 + $0x1f0] sm:$0xff] }
  0xc4   : > { %v297_v13 = vmul.f32 0.5, %v296_v5  ;;  %v520_v3 = vld [vmem:[%s1534_s27 + $0x5f0] sm:$0xff] }
  0xc5   : > { %v1717_v14 = vmul.f32 %v314_v60, %v304_v6  ;;  %v1719_v15 = vmul.f32 %v315_v61, %v305_v10  ;;  %v1721_v16 = vmul.f32 %v316_v62, %v306_v11  ;;  %v1723_v0 = vmul.f32 %v317_v63, %v307_v12  ;;  %v356_v58 = vld [vmem:[%s1534_s27 + $0xd0] sm:$0xff] }
  0xc6   : > { %v298_v1 = vsub.f32 1.5, %v297_v13  ;;  %v420_v59 = vld [vmem:[%s1534_s27 + $0x2d0] sm:$0xff] }
  0xc7   : > { %602 = vmatmul.f32.vlgmr.msra.gmra.mxu0 %v1717_v14  ;;  %625 = vmatmul.f32.vlgmr.msra.gmra.mxu1 %v1719_v15  ;;  %v480_v4 = vld [vmem:[%s1534_s27 + $0x4b0] sm:$0xff] }
  0xc8   : > { %v299_v19 = vmul.f32 %v1202_v57, %v298_v1  ;;  %648 = vmatmul.f32.vlgmr.msra.gmra.mxu2 %v1721_v16  ;;  %671 = vmatmul.f32.vlgmr.msra.gmra.mxu3 %v1723_v0  ;;  %v544_v5 = vld [vmem:[%s1534_s27 + $0x6b0] sm:$0xff] }
  0xc9   : > { %770 = vmatpush.msra.mxu0 %v392_v2  ;;  %793 = vmatpush.msra.mxu1 %v456_v17  ;;  %v348_v6 = vld [vmem:[%s1534_s27 + $0x90] sm:$0xff] }
  0xca   : > { %v303_v24 = vsel %vm302_vm6, %v1202_v57, %v299_v19  ;;  %816 = vmatpush.msra.mxu2 %v520_v3  ;;  %839 = vmatpush.msra.mxu3 %v584_v18  ;;  %v552_v57 = vld [vmem:[%s1534_s27 + $0x6f0] sm:$0xff] }
  0xcb   : > { %771 = vmatpush.msra.mxu0 %v388_v20  ;;  %794 = vmatpush.msra.mxu1 %v452_v21  ;;  %v308_v30 = vmul.f32 %v303_v24, %v1554_v7  ;;  %v309_v31 = vmul.f32 %v303_v24, %v1556_v8  ;;  %v310_v32 = vmul.f32 %v303_v24, %v1558_v9  ;;  %v412_v10 = vld [vmem:[%s1534_s27 + $0x290] sm:$0xff] }
  0xcc   : > { %817 = vmatpush.msra.mxu2 %v516_v22  ;;  %840 = vmatpush.msra.mxu3 %v580_v23  ;;  %v311_v35 = vmul.f32 %v303_v24, %v1578_v27  ;;  %v376_v27 = vld [vmem:[%s1534_s27 + $0x170] sm:$0xff] }
  0xcd   : > { %772 = vmatpush.msra.mxu0 %v384_v25  ;;  %795 = vmatpush.msra.mxu1 %v448_v26  ;;  %v1749_v38 = vmul.f32 %v314_v60, %v308_v30  ;;  %v1751_v7 = vmul.f32 %v315_v61, %v309_v31  ;;  %v1753_v8 = vmul.f32 %v316_v62, %v310_v32  ;;  %v484_v60 = vld [vmem:[%s1534_s27 + $0x4d0] sm:$0xff]  ;;  %v393_v30 = vld [vmem:[%s1534_s27 + $0x1f8] sm:$0xff] }
  0xce   : > { %818 = vmatpush.msra.mxu2 %v512_v28  ;;  %841 = vmatpush.msra.mxu3 %v576_v29  ;;  %v1755_v9 = vmul.f32 %v317_v63, %v311_v35  ;;  %v548_v61 = vld [vmem:[%s1534_s27 + $0x6d0] sm:$0xff]  ;;  %v457_v31 = vld [vmem:[%s1534_s27 + $0x3f8] sm:$0xff] }
  0xcf   : > { %773 = vmatpush.msra.mxu0 %v380_v33  ;;  %796 = vmatpush.msra.mxu1 %v444_v34  ;;  %v352_v62 = vld [vmem:[%s1534_s27 + $0xb0] sm:$0xff]  ;;  %v521_v32 = vld [vmem:[%s1534_s27 + $0x5f8] sm:$0xff] }
  0xd0   : > { %819 = vmatpush.msra.mxu2 %v508_v36  ;;  %842 = vmatpush.msra.mxu3 %v572_v37  ;;  %v416_v63 = vld [vmem:[%s1534_s27 + $0x2b0] sm:$0xff]  ;;  %v585_v33 = vld [vmem:[%s1534_s27 + $0x7f8] sm:$0xff] }
  0xd1   : > { %605 = vmatmul.f32.gmra.mxu0 %v1749_v38  ;;  %628 = vmatmul.f32.gmra.mxu1 %v1751_v7  ;;  %v476_v11 = vld [vmem:[%s1534_s27 + $0x490] sm:$0xff]  ;;  %v389_v34 = vld [vmem:[%s1534_s27 + $0x1d8] sm:$0xff] }
  0xd2   : > { %651 = vmatmul.f32.gmra.mxu2 %v1753_v8  ;;  %674 = vmatmul.f32.gmra.mxu3 %v1755_v9  ;;  %v540_v12 = vld [vmem:[%s1534_s27 + $0x690] sm:$0xff]  ;;  %v453_v35 = vld [vmem:[%s1534_s27 + $0x3d8] sm:$0xff] }
  0xd3   : > { %774 = vmatpush.msra.mxu0 %v376_v27  ;;  %797 = vmatpush.msra.mxu1 %v440_v39  ;;  %v344_v13 = vld [vmem:[%s1534_s27 + $0x70] sm:$0xff]  ;;  %v517_v36 = vld [vmem:[%s1534_s27 + $0x5d8] sm:$0xff] }
  0xd4   : > { %820 = vmatpush.msra.mxu2 %v504_v40  ;;  %843 = vmatpush.msra.mxu3 %v568_v41  ;;  %v408_v1 = vld [vmem:[%s1534_s27 + $0x270] sm:$0xff]  ;;  %v581_v37 = vld [vmem:[%s1534_s27 + $0x7d8] sm:$0xff] }
  0xd5   : > { %775 = vmatpush.msra.mxu0 %v372_v42  ;;  %798 = vmatpush.msra.mxu1 %v436_v43  ;;  %v472_v2 = vld [vmem:[%s1534_s27 + $0x470] sm:$0xff]  ;;  %v385_v27 = vld [vmem:[%s1534_s27 + $0x1b8] sm:$0xff] }
  0xd6   : > { %821 = vmatpush.msra.mxu2 %v500_v44  ;;  %844 = vmatpush.msra.mxu3 %v564_v45  ;;  %v536_v17 = vld [vmem:[%s1534_s27 + $0x670] sm:$0xff]  ;;  %v449_v39 = vld [vmem:[%s1534_s27 + $0x3b8] sm:$0xff] }
  0xd7   : > { %776 = vmatpush.msra.mxu0 %v368_v46  ;;  %799 = vmatpush.msra.mxu1 %v432_v47  ;;  %v340_v3 = vld [vmem:[%s1534_s27 + $0x50] sm:$0xff]  ;;  %v513_v40 = vld [vmem:[%s1534_s27 + $0x5b8] sm:$0xff] }
  0xd8   : > { %822 = vmatpush.msra.mxu2 %v496_v48  ;;  %845 = vmatpush.msra.mxu3 %v560_v49  ;;  %v404_v18 = vld [vmem:[%s1534_s27 + $0x250] sm:$0xff]  ;;  %v577_v41 = vld [vmem:[%s1534_s27 + $0x7b8] sm:$0xff] }
  0xd9   : > { %777 = vmatpush.msra.mxu0 %v364_v50  ;;  %800 = vmatpush.msra.mxu1 %v428_v51  ;;  %v468_v19 = vld [vmem:[%s1534_s27 + $0x450] sm:$0xff]  ;;  %v381_v42 = vld [vmem:[%s1534_s27 + $0x198] sm:$0xff] }
  0xda   : > { %823 = vmatpush.msra.mxu2 %v492_v52  ;;  %846 = vmatpush.msra.mxu3 %v556_v53  ;;  %v532_v20 = vld [vmem:[%s1534_s27 + $0x650] sm:$0xff]  ;;  %v445_v43 = vld [vmem:[%s1534_s27 + $0x398] sm:$0xff] }
  0xdb   : > { %694 = vmatmul.f32.vlgmr.msrb.gmra.mxu0 %v1717_v14  ;;  %717 = vmatmul.f32.vlgmr.msrb.gmra.mxu1 %v1719_v15  ;;  %v336_v21 = vld [vmem:[%s1534_s27 + $0x30] sm:$0xff]  ;;  %v509_v44 = vld [vmem:[%s1534_s27 + $0x598] sm:$0xff] }
  0xdc   : > { %740 = vmatmul.f32.vlgmr.msrb.gmra.mxu2 %v1721_v16  ;;  %763 = vmatmul.f32.vlgmr.msrb.gmra.mxu3 %v1723_v0  ;;  %v400_v22 = vld [vmem:[%s1534_s27 + $0x230] sm:$0xff]  ;;  %v573_v45 = vld [vmem:[%s1534_s27 + $0x798] sm:$0xff] }
  0xdd   : > { %778 = vmatpush.msra.mxu0 %v360_v54  ;;  %801 = vmatpush.msra.mxu1 %v424_v55  ;;  %v464_v23 = vld [vmem:[%s1534_s27 + $0x430] sm:$0xff]  ;;  %v377_v46 = vld [vmem:[%s1534_s27 + $0x178] sm:$0xff] }
  0xde   : > { %824 = vmatpush.msra.mxu2 %v488_v56  ;;  %847 = vmatpush.msra.mxu3 %v552_v57  ;;  %v528_v24 = vld [vmem:[%s1534_s27 + $0x630] sm:$0xff]  ;;  %v441_v47 = vld [vmem:[%s1534_s27 + $0x378] sm:$0xff] }
  0xdf   : > { %779 = vmatpush.msra.mxu0 %v356_v58  ;;  %802 = vmatpush.msra.mxu1 %v420_v59  ;;  %v332_v25 = vld [vmem:[%s1534_s27 + $0x10] sm:$0xff]  ;;  %v505_v48 = vld [vmem:[%s1534_s27 + $0x578] sm:$0xff] }
  0xe0   : > { %825 = vmatpush.msra.mxu2 %v484_v60  ;;  %848 = vmatpush.msra.mxu3 %v548_v61  ;;  %v396_v26 = vld [vmem:[%s1534_s27 + $0x210] sm:$0xff]  ;;  %v569_v49 = vld [vmem:[%s1534_s27 + $0x778] sm:$0xff] }
  0xe1   : > { %780 = vmatpush.msra.mxu0 %v352_v62  ;;  %803 = vmatpush.msra.mxu1 %v416_v63  ;;  %v460_v28 = vld [vmem:[%s1534_s27 + $0x410] sm:$0xff]  ;;  %v373_v50 = vld [vmem:[%s1534_s27 + $0x158] sm:$0xff] }
  0xe2   : > { %826 = vmatpush.msra.mxu2 %v480_v4  ;;  %849 = vmatpush.msra.mxu3 %v544_v5  ;;  %v524_v29 = vld [vmem:[%s1534_s27 + $0x610] sm:$0xff]  ;;  %v437_v51 = vld [vmem:[%s1534_s27 + $0x358] sm:$0xff] }
  0xe3   : > { %781 = vmatpush.msra.mxu0 %v348_v6  ;;  %804 = vmatpush.msra.mxu1 %v412_v10  ;;  %v501_v52 = vld [vmem:[%s1534_s27 + $0x558] sm:$0xff] }
  0xe4   : > { %827 = vmatpush.msra.mxu2 %v476_v11  ;;  %850 = vmatpush.msra.mxu3 %v540_v12  ;;  %v565_v53 = vld [vmem:[%s1534_s27 + $0x758] sm:$0xff] }
  0xe5   : > { %697 = vmatmul.f32.gmra.mxu0 %v1749_v38  ;;  %720 = vmatmul.f32.gmra.mxu1 %v1751_v7  ;;  %v369_v54 = vld [vmem:[%s1534_s27 + $0x138] sm:$0xff] }
  0xe6   : > { %743 = vmatmul.f32.gmra.mxu2 %v1753_v8  ;;  %766 = vmatmul.f32.gmra.mxu3 %v1755_v9  ;;  %v433_v55 = vld [vmem:[%s1534_s27 + $0x338] sm:$0xff] }
  0xe7   : > { %782 = vmatpush.msra.mxu0 %v344_v13  ;;  %805 = vmatpush.msra.mxu1 %v408_v1  ;;  %v497_v56 = vld [vmem:[%s1534_s27 + $0x538] sm:$0xff] }
  0xe8   : > { %828 = vmatpush.msra.mxu2 %v472_v2  ;;  %851 = vmatpush.msra.mxu3 %v536_v17  ;;  %v561_v57 = vld [vmem:[%s1534_s27 + $0x738] sm:$0xff] }
  0xe9   : > { %783 = vmatpush.msra.mxu0 %v340_v3  ;;  %806 = vmatpush.msra.mxu1 %v404_v18  ;;  %v365_v58 = vld [vmem:[%s1534_s27 + $0x118] sm:$0xff] }
  0xea   : > { %829 = vmatpush.msra.mxu2 %v468_v19  ;;  %852 = vmatpush.msra.mxu3 %v532_v20  ;;  %v429_v59 = vld [vmem:[%s1534_s27 + $0x318] sm:$0xff] }
  0xeb   : > { %784 = vmatpush.msra.mxu0 %v336_v21  ;;  %807 = vmatpush.msra.mxu1 %v400_v22  ;;  %v493_v60 = vld [vmem:[%s1534_s27 + $0x518] sm:$0xff] }
  0xec   : > { %830 = vmatpush.msra.mxu2 %v464_v23  ;;  %853 = vmatpush.msra.mxu3 %v528_v24  ;;  %v557_v61 = vld [vmem:[%s1534_s27 + $0x718] sm:$0xff] }
  0xed   : > { %785 = vmatpush.msra.mxu0 %v332_v25  ;;  %808 = vmatpush.msra.mxu1 %v396_v26  ;;  %v361_v62 = vld [vmem:[%s1534_s27 + $0xf8] sm:$0xff] }
  0xee   : > { %831 = vmatpush.msra.mxu2 %v460_v28  ;;  %854 = vmatpush.msra.mxu3 %v524_v29  ;;  %v425_v63 = vld [vmem:[%s1534_s27 + $0x2f8] sm:$0xff] }
  0xef   : > { %862 = vmatpush.msrb.mxu0 %v393_v30  ;;  %885 = vmatpush.msrb.mxu1 %v457_v31  ;;  %v489_v4 = vld [vmem:[%s1534_s27 + $0x4f8] sm:$0xff] }
  0xf0   : > { %908 = vmatpush.msrb.mxu2 %v521_v32  ;;  %931 = vmatpush.msrb.mxu3 %v585_v33  ;;  %v553_v5 = vld [vmem:[%s1534_s27 + $0x6f8] sm:$0xff] }
  0xf1   : > { %786 = vmatmul.f32.vlgmr.msra.gmra.mxu0 %v1717_v14  ;;  %809 = vmatmul.f32.vlgmr.msra.gmra.mxu1 %v1719_v15  ;;  %v357_v6 = vld [vmem:[%s1534_s27 + $0xd8] sm:$0xff] }
  0xf2   : > { %832 = vmatmul.f32.vlgmr.msra.gmra.mxu2 %v1721_v16  ;;  %855 = vmatmul.f32.vlgmr.msra.gmra.mxu3 %v1723_v0  ;;  %v421_v10 = vld [vmem:[%s1534_s27 + $0x2d8] sm:$0xff] }
  0xf3   : > { %863 = vmatpush.msrb.mxu0 %v389_v34  ;;  %886 = vmatpush.msrb.mxu1 %v453_v35  ;;  %v485_v11 = vld [vmem:[%s1534_s27 + $0x4d8] sm:$0xff] }
  0xf4   : > { %909 = vmatpush.msrb.mxu2 %v517_v36  ;;  %932 = vmatpush.msrb.mxu3 %v581_v37  ;;  %v549_v12 = vld [vmem:[%s1534_s27 + $0x6d8] sm:$0xff] }
  0xf5   : > { %864 = vmatpush.msrb.mxu0 %v385_v27  ;;  %887 = vmatpush.msrb.mxu1 %v449_v39  ;;  %v353_v13 = vld [vmem:[%s1534_s27 + $0xb8] sm:$0xff] }
  0xf6   : > { %910 = vmatpush.msrb.mxu2 %v513_v40  ;;  %933 = vmatpush.msrb.mxu3 %v577_v41  ;;  %v417_v1 = vld [vmem:[%s1534_s27 + $0x2b8] sm:$0xff] }
  0xf7   : > { %865 = vmatpush.msrb.mxu0 %v381_v42  ;;  %888 = vmatpush.msrb.mxu1 %v445_v43  ;;  %v481_v2 = vld [vmem:[%s1534_s27 + $0x4b8] sm:$0xff] }
  0xf8   : > { %911 = vmatpush.msrb.mxu2 %v509_v44  ;;  %934 = vmatpush.msrb.mxu3 %v573_v45  ;;  %v545_v17 = vld [vmem:[%s1534_s27 + $0x6b8] sm:$0xff] }
  0xf9   : > { %866 = vmatpush.msrb.mxu0 %v377_v46  ;;  %889 = vmatpush.msrb.mxu1 %v441_v47  ;;  %v349_v3 = vld [vmem:[%s1534_s27 + $0x98] sm:$0xff] }
  0xfa   : > { %912 = vmatpush.msrb.mxu2 %v505_v48  ;;  %935 = vmatpush.msrb.mxu3 %v569_v49  ;;  %v413_v18 = vld [vmem:[%s1534_s27 + $0x298] sm:$0xff] }
  0xfb   : > { %789 = vmatmul.f32.gmra.mxu0 %v1749_v38  ;;  %812 = vmatmul.f32.gmra.mxu1 %v1751_v7  ;;  %v477_v19 = vld [vmem:[%s1534_s27 + $0x498] sm:$0xff] }
  0xfc   : > { %835 = vmatmul.f32.gmra.mxu2 %v1753_v8  ;;  %858 = vmatmul.f32.gmra.mxu3 %v1755_v9  ;;  %v541_v20 = vld [vmem:[%s1534_s27 + $0x698] sm:$0xff] }
  0xfd   : > { %867 = vmatpush.msrb.mxu0 %v373_v50  ;;  %890 = vmatpush.msrb.mxu1 %v437_v51  ;;  %v345_v21 = vld [vmem:[%s1534_s27 + $0x78] sm:$0xff] }
  0xfe   : > { %913 = vmatpush.msrb.mxu2 %v501_v52  ;;  %936 = vmatpush.msrb.mxu3 %v565_v53  ;;  %v409_v22 = vld [vmem:[%s1534_s27 + $0x278] sm:$0xff] }
  0xff   : > { %868 = vmatpush.msrb.mxu0 %v369_v54  ;;  %891 = vmatpush.msrb.mxu1 %v433_v55  ;;  %v473_v23 = vld [vmem:[%s1534_s27 + $0x478] sm:$0xff] }
 0x100   : > { %914 = vmatpush.msrb.mxu2 %v497_v56  ;;  %937 = vmatpush.msrb.mxu3 %v561_v57  ;;  %v537_v24 = vld [vmem:[%s1534_s27 + $0x678] sm:$0xff] }
 0x101   : > { %869 = vmatpush.msrb.mxu0 %v365_v58  ;;  %892 = vmatpush.msrb.mxu1 %v429_v59  ;;  %v341_v25 = vld [vmem:[%s1534_s27 + $0x58] sm:$0xff] }
 0x102   : > { %915 = vmatpush.msrb.mxu2 %v493_v60  ;;  %938 = vmatpush.msrb.mxu3 %v557_v61  ;;  %v405_v26 = vld [vmem:[%s1534_s27 + $0x258] sm:$0xff] }
 0x103   : > { %870 = vmatpush.msrb.mxu0 %v361_v62  ;;  %893 = vmatpush.msrb.mxu1 %v425_v63  ;;  %v469_v28 = vld [vmem:[%s1534_s27 + $0x458] sm:$0xff] }
 0x104   : > { %916 = vmatpush.msrb.mxu2 %v489_v4  ;;  %939 = vmatpush.msrb.mxu3 %v553_v5  ;;  %v533_v29 = vld [vmem:[%s1534_s27 + $0x658] sm:$0xff] }
 0x105   : > { %871 = vmatpush.msrb.mxu0 %v357_v6  ;;  %894 = vmatpush.msrb.mxu1 %v421_v10  ;;  %v337_v30 = vld [vmem:[%s1534_s27 + $0x38] sm:$0xff] }
 0x106   : > { %917 = vmatpush.msrb.mxu2 %v485_v11  ;;  %940 = vmatpush.msrb.mxu3 %v549_v12  ;;  %v401_v31 = vld [vmem:[%s1534_s27 + $0x238] sm:$0xff] }
 0x107   : > { %872 = vmatpush.msrb.mxu0 %v353_v13  ;;  %895 = vmatpush.msrb.mxu1 %v417_v1  ;;  %v465_v32 = vld [vmem:[%s1534_s27 + $0x438] sm:$0xff] }
 0x108   : > { %918 = vmatpush.msrb.mxu2 %v481_v2  ;;  %941 = vmatpush.msrb.mxu3 %v545_v17  ;;  %v529_v33 = vld [vmem:[%s1534_s27 + $0x638] sm:$0xff] }
 0x109   : > { %873 = vmatpush.msrb.mxu0 %v349_v3  ;;  %896 = vmatpush.msrb.mxu1 %v413_v18  ;;  %v333_v34 = vld [vmem:[%s1534_s27 + $0x18] sm:$0xff] }
 0x10a   : > { %919 = vmatpush.msrb.mxu2 %v477_v19  ;;  %942 = vmatpush.msrb.mxu3 %v541_v20  ;;  %v397_v35 = vld [vmem:[%s1534_s27 + $0x218] sm:$0xff] }
 0x10b   : > { %874 = vmatpush.msrb.mxu0 %v345_v21  ;;  %897 = vmatpush.msrb.mxu1 %v409_v22  ;;  %v461_v36 = vld [vmem:[%s1534_s27 + $0x418] sm:$0xff] }
 0x10c   : > { %920 = vmatpush.msrb.mxu2 %v473_v23  ;;  %943 = vmatpush.msrb.mxu3 %v537_v24  ;;  %v525_v37 = vld [vmem:[%s1534_s27 + $0x618] sm:$0xff] }
 0x10d   : > { %875 = vmatpush.msrb.mxu0 %v341_v25  ;;  %898 = vmatpush.msrb.mxu1 %v405_v26 }
 0x10e   : > { %921 = vmatpush.msrb.mxu2 %v469_v28  ;;  %944 = vmatpush.msrb.mxu3 %v533_v29 }
 0x10f   : > { %876 = vmatpush.msrb.mxu0 %v337_v30  ;;  %899 = vmatpush.msrb.mxu1 %v401_v31 }
 0x110   : > { %922 = vmatpush.msrb.mxu2 %v465_v32  ;;  %945 = vmatpush.msrb.mxu3 %v529_v33 }
 0x111   : > { %877 = vmatpush.msrb.mxu0 %v333_v34  ;;  %900 = vmatpush.msrb.mxu1 %v397_v35 }
 0x112   : > { %923 = vmatpush.msrb.mxu2 %v461_v36  ;;  %946 = vmatpush.msrb.mxu3 %v525_v37 }
 0x113   : > { %878 = vmatmul.f32.vlgmr.msrb.gmra.mxu0 %v1717_v14  ;;  %901 = vmatmul.f32.vlgmr.msrb.gmra.mxu1 %v1719_v15 }
 0x114   : > { %924 = vmatmul.f32.vlgmr.msrb.gmra.mxu2 %v1721_v16  ;;  %947 = vmatmul.f32.vlgmr.msrb.gmra.mxu3 %v1723_v0 }
 0x11b   : > { %881 = vmatmul.f32.gmra.mxu0 %v1749_v38  ;;  %904 = vmatmul.f32.gmra.mxu1 %v1751_v7 }
 0x11c   : > { %927 = vmatmul.f32.gmra.mxu2 %v1753_v8  ;;  %950 = vmatmul.f32.gmra.mxu3 %v1755_v9 }
 0x144   : > { %v603_v27 = vpop.f32.mrf.mxu0  ;;  %v626_v39 = vpop.f32.mrf.mxu1 }
 0x145   : > { %v627_v40 = vadd.f32 %v626_v39, %v603_v27 }
 0x14b   : > { %v649_v41 = vpop.f32.mrf.mxu2  ;;  %v672_v42 = vpop.f32.mrf.mxu3 }
 0x14c   : > { %v650_v14 = vadd.f32 %v649_v41, %v627_v40 }
 0x14e   : > { %v673_v15 = vadd.f32 %v672_v42, %v650_v14  ;;  %v606_v16 = vpop.f32.mrf.mxu0  ;;  %v629_v0 = vpop.f32.mrf.mxu1 }
 0x14f   : > { %v630_v38 = vadd.f32 %v629_v0, %v606_v16 }
 0x150   : > { %954 = vst [vmem:[%s1898_s21] sm:$0xff] %v673_v15 }
 0x155   : > { %v652_v7 = vpop.f32.mrf.mxu2  ;;  %v675_v9 = vpop.f32.mrf.mxu3 }
 0x156   : > { %v653_v8 = vadd.f32 %v652_v7, %v630_v38 }
 0x158   : > { %v676_v43 = vadd.f32 %v675_v9, %v653_v8  ;;  %v695_v44 = vpop.f32.mrf.mxu0  ;;  %v718_v45 = vpop.f32.mrf.mxu1 }
 0x159   : > { %v719_v46 = vadd.f32 %v718_v45, %v695_v44 }
 0x15a   : > { %958 = vst [vmem:[%s1898_s21 + $0x20] sm:$0xff] %v676_v43 }
 0x15f   : > { %v741_v47 = vpop.f32.mrf.mxu2  ;;  %v764_v49 = vpop.f32.mrf.mxu3 }
 0x160   : > { %v742_v48 = vadd.f32 %v741_v47, %v719_v46 }
 0x162   : > { %v765_v50 = vadd.f32 %v764_v49, %v742_v48  ;;  %v698_v51 = vpop.f32.mrf.mxu0  ;;  %v721_v52 = vpop.f32.mrf.mxu1 }
 0x163   : > { %v722_v53 = vadd.f32 %v721_v52, %v698_v51 }
 0x164   : > { %955 = vst [vmem:[%s1898_s21 + $0x8] sm:$0xff] %v765_v50 }
 0x169   : > { %v744_v54 = vpop.f32.mrf.mxu2  ;;  %v767_v56 = vpop.f32.mrf.mxu3 }
 0x16a   : > { %v745_v55 = vadd.f32 %v744_v54, %v722_v53 }
 0x16c   : > { %v768_v57 = vadd.f32 %v767_v56, %v745_v55 }
 0x16e   : > { %959 = vst [vmem:[%s1898_s21 + $0x28] sm:$0xff] %v768_v57  ;;  %v787_v58 = vpop.f32.mrf.mxu0  ;;  %v810_v59 = vpop.f32.mrf.mxu1 }
 0x16f   : > { %v811_v60 = vadd.f32 %v810_v59, %v787_v58 }
 0x175   : > { %v833_v61 = vpop.f32.mrf.mxu2  ;;  %v856_v63 = vpop.f32.mrf.mxu3 }
 0x176   : > { %v834_v62 = vadd.f32 %v833_v61, %v811_v60 }
 0x178   : > { %v857_v4 = vadd.f32 %v856_v63, %v834_v62  ;;  %v790_v5 = vpop.f32.mrf.mxu0  ;;  %v813_v6 = vpop.f32.mrf.mxu1 }
 0x179   : > { %v814_v10 = vadd.f32 %v813_v6, %v790_v5 }
 0x17a   : > { %956 = vst [vmem:[%s1898_s21 + $0x10] sm:$0xff] %v857_v4 }
 0x17f   : > { %v836_v11 = vpop.f32.mrf.mxu2  ;;  %v859_v13 = vpop.f32.mrf.mxu3 }
 0x180   : > { %v837_v12 = vadd.f32 %v836_v11, %v814_v10 }
 0x182   : > { %v860_v1 = vadd.f32 %v859_v13, %v837_v12 }
 0x184   : > { %960 = vst [vmem:[%s1898_s21 + $0x30] sm:$0xff] %v860_v1 }
 0x190   : > { %v879_v2 = vpop.f32.mrf.mxu0  ;;  %v902_v17 = vpop.f32.mrf.mxu1 }
 0x191   : > { %v903_v3 = vadd.f32 %v902_v17, %v879_v2 }
 0x197   : > { %v925_v18 = vpop.f32.mrf.mxu2  ;;  %v948_v19 = vpop.f32.mrf.mxu3 }
 0x198   : > { %v926_v20 = vadd.f32 %v925_v18, %v903_v3  ;;  %v882_v22 = vpop.f32.mrf.mxu0  ;;  %v905_v23 = vpop.f32.mrf.mxu1 }
 0x199   : > { %v906_v24 = vadd.f32 %v905_v23, %v882_v22 }
 0x19a   : > { %v949_v21 = vadd.f32 %v948_v19, %v926_v20 }
 0x19c   : > { %957 = vst [vmem:[%s1898_s21 + $0x18] sm:$0xff] %v949_v21 }
 0x19f   : > { %v928_v25 = vpop.f32.mrf.mxu2  ;;  %v951_v28 = vpop.f32.mrf.mxu3 }
 0x1a0   : > { %v929_v26 = vadd.f32 %v928_v25, %v906_v24 }
 0x1a2   : > { %v952_v29 = vadd.f32 %v951_v28, %v929_v26 }
 0x1a4   : > { %961 = vst [vmem:[%s1898_s21 + $0x38] sm:$0xff] %v952_v29 }
 0x1a5   : > { %1320 = shalt.err (!%p1317_p0)
}
 0x1a6   : > { %s1391_s8 = smov 512   ;;  %s1392_s0 = smov 1024  }
 0x1a7   : > { %s1393_s1 = smov 32  }
 0x1a8   : > { %1117 = dma.vmem_to_hbm [thread:$0]  (%p1465_p8), %s979_s28, 1024, %s981_s20, %s963_s15, %s1391_s8, %s1392_s0, %s1393_s1  }
 0x1a9 PF: > { %s1968_s17 = sld [smem:[#allocation13_spill]]  ;;  %s995_s27 = sand.u32 1, %s1363_s12  }
 0x1aa   : > { %p1131_p2 = pnand %p1091_p1, %p1470_p10  ;;  %s996_s18 = scalar_lea.sflag [#allocation4], %s995_s27 }
 0x1ac   : > { %p1132_p5 = pneg %p1131_p2 }
 0x1ae   : > { %1358 = dma.done.wait (%p1132_p5), %s996_s18, 1024  }
 0x1af   : > { %1360 = vsyncadd (%p1132_p5), %s996_s18, 4294966272  ;;  %s18_s17 = sadd.s32 1, %s1968_s17   ;;  %s1969_s12 = smov %s1367_s13 }
 0x1b0   : > { %p15_p7 = scmp.ge.s32.totalorder %s18_s17, 4   ;;  %s1970_s13 = smov %s1371_s14 }
 0x1b1   : > { %s1971_s14 = smov %s1513_s6  ;;  %s1972_s15 = smov %s1379_s16 }
 0x1b2   : > { %s1973_s16 = smov %s1975_s19  ;;  %17 = sbr.rel (!%p15_p7) target bundleno = 9 (0x9), region = 85 }
 0x1b7   :  { %1002 = vsyncpa [#allocation3], 1 }
 0x1b8   :  { %1004 = vsyncpa [#allocation3 + $0x1], 1 }
 0x1b9   :  { %1005 = vsyncpa [#allocation6], 1 }
 0x1ba   :  { %1006 = vsyncpa [#allocation4], 1 }
 0x1bb   :  { %1008 = vsyncpa [#allocation4 + $0x1], 1 }

</bundles_post_ra>
